<compile_context>
chip_gen: v7x
topology: tpu7x:2x2x1
jax: 0.10.0
libtpu: 0.0.40
codegen_flags: <defaults>
</compile_context>

<pallas_src>
import jax
import jax.numpy as jnp
from jax.experimental import pallas as pl
from jax.experimental.pallas import tpu as pltpu


def plm_atten_kernel(content_ref, refs_ref, wt_ref, b_ref, out_ref):
    """way_ref='atten' (CitationParser) + concat, with_linear=True, ratio_ref=None.

    Block shapes: content (TB, D), refs (TB, R, D), weight (D, E_pad), bias (1, E_pad),
    output (TB, 2*E_pad). Processes TB papers per grid step.
    """
    TB, R, D = refs_ref.shape
    E = wt_ref.shape[1]                                   # lane-padded embed dim
    wt = wt_ref[...]                                      # (D, E) pre-transposed weight
    b = b_ref[...]                                        # (1, E) f32

    # Projections as full MXU matmuls (M = TB and M = TB * R), f32 accumulation.
    c_lin = jnp.dot(content_ref[...], wt,
                    preferred_element_type=jnp.float32) + b                 # (TB, E)
    r_flat = refs_ref[...].reshape(TB * R, D)
    r_lin = (jnp.dot(r_flat, wt,
                     preferred_element_type=jnp.float32) + b).reshape(TB, R, E)

    # sim[p, r] = <c_lin[p], r_lin[p, r]>  (sublane broadcast + lane reduce over E).
    sim = jnp.sum(c_lin[:, None, :] * r_lin, axis=-1)                       # (TB, R)

    # Softmax over each paper's R references; reciprocal on EUP (off the VPU path).
    m = jnp.max(sim, axis=-1, keepdims=True)
    e = jnp.exp(sim - m)
    attn = e * pl.reciprocal(jnp.sum(e, axis=-1, keepdims=True), approx=True)

    # Attention-weighted sum of the projected refs.
    weighted = jnp.sum(attn[:, :, None] * r_lin, axis=1)                    # (TB, E)

    # paper_embedding = cat(content, weighted_refs): lane-aligned slab stores (E % 128 == 0).
    out_ref[:, :E] = c_lin.astype(out_ref.dtype)
    out_ref[:, E:] = weighted.astype(out_ref.dtype)


def plm_avg_kernel(content_ref, refs_ref, wt_ref, b_ref, out_ref):
    """way_ref='avg' (AvgParser) + concat, with_linear=True, ratio_ref=None."""
    E = wt_ref.shape[1]
    wt = wt_ref[...]
    b = b_ref[...]
    c_lin = jnp.dot(content_ref[...], wt,
                    preferred_element_type=jnp.float32) + b                 # (TB, E)
    # mean(refs) @ W + b == mean(refs @ W + b): average raw refs BEFORE the projection
    # (removes the R-fold factor from the refs matmul). Reduce in f32 on the VPU, then
    # cast DOWN to the weight dtype so the matmul stays a native-precision MXU op
    # (no f32 weight copy, no multi-pass f32 matmul).
    r_mean = jnp.mean(refs_ref[...].astype(jnp.float32), axis=1).astype(wt.dtype)
    ref_avg = jnp.dot(r_mean, wt, preferred_element_type=jnp.float32) + b   # (TB, E)
    out_ref[:, :E] = c_lin.astype(out_ref.dtype)
    out_ref[:, E:] = ref_avg.astype(out_ref.dtype)


def plm_encoder_pallas(content_embeddings, refs_embeddings, w, b,
                       way_ref="atten", block_b=256, use_bf16=True):
    """Pallas implementation of PLMEncoder.forward aggregation (with_linear=True,
    ratio_ref=None). Grid iterates over blocks of TB papers; each step projects a
    (TB, D) content slab and a (TB, R, D) refs slab in VMEM, aggregates the refs
    ('atten' or 'avg') and writes the concatenated (TB, 2*E_pad) output slab.

    Args:
      content_embeddings: (B, D) BERT CLS embeddings of paper contents.
      refs_embeddings:    (B, R, D) BERT CLS embeddings of the R references per paper.
      w, b: nn.Linear(default_bert_dim -> embed_dim) params, shapes (E, D) and (1, E).
      use_bf16: cast matmul operands to bf16 (f32 accumulation); recommended on
                v5e/v6e/v7x. Set False for bit-tight f32 reference comparison.
    """
    B, D = content_embeddings.shape
    _, R, D2 = refs_embeddings.shape
    assert D == D2
    E = w.shape[0]

    compute_dtype = jnp.bfloat16 if use_bf16 else jnp.float32
    itemsize = jnp.dtype(compute_dtype).itemsize

    # Lane-align the MXU N dim and the output stores: pad embed_dim to a 128 multiple.
    E_pad = pl.cdiv(E, 128) * 128
    w_t = jnp.zeros((D, E_pad), dtype=compute_dtype)
    w_t = w_t.at[:, :E].set(jnp.asarray(w, jnp.float32).T.astype(compute_dtype))
    bias = jnp.zeros((1, E_pad), dtype=jnp.float32)
    bias = bias.at[:, :E].set(jnp.asarray(b, jnp.float32).reshape(1, E))
    content = content_embeddings.astype(compute_dtype)
    refs = refs_embeddings.astype(compute_dtype)

    # ---- Generation-aware VMEM budgeting -------------------------------------------
    try:
        vmem_physical = int(pltpu.get_tpu_info().vmem_capacity_bytes)
    except Exception:
        vmem_physical = 64 * 1024 * 1024          # conservative (v7x-sized) fallback
    # v5e/v6e (128 MiB phys) -> ~64 MiB scoped; v7x (64 MiB phys) -> keep >=50% free.
    vmem_limit = max(16 * 1024 * 1024, min(vmem_physical // 2, 100 * 1024 * 1024))
    tile_budget = int(vmem_limit * 0.75)          # headroom for compiler internal scratch

    def _vmem_block_bytes(tb):
        in_bytes = 2 * tb * (R + 1) * D * itemsize          # dbl-buffered content + refs
        out_bytes = 2 * tb * 2 * E_pad * 4                  # dbl-buffered f32 output
        w_bytes = D * E_pad * itemsize + E_pad * 4          # single-buffered weight + bias
        # f32 in-kernel temporaries: c_lin, r_lin and the two (TB,R,E) broadcast products
        tmp_bytes = tb * E_pad * 4 + 3 * tb * R * E_pad * 4
        return in_bytes + out_bytes + w_bytes + tmp_bytes

    if B >= 8:
        TB = max(8, (min(block_b, B) // 8) * 8)
        while TB > 8 and _vmem_block_bytes(TB) > tile_budget:
            TB = max(8, ((TB // 2) // 8) * 8)
        # Ensure >= 2 grid steps when possible so ("parallel",) can use both v7x TCs.
        if pl.cdiv(B, TB) < 2 and TB >= 16:
            TB = max(8, ((TB // 2) // 8) * 8)
    else:
        TB = B        # block equals full array dims -> (8,128) rule satisfied

    B_pad = pl.cdiv(B, TB) * TB
    if B_pad != B:
        content = jnp.pad(content, ((0, B_pad - B), (0, 0)))
        refs = jnp.pad(refs, ((0, B_pad - B), (0, 0), (0, 0)))

    kernel = plm_atten_kernel if way_ref == "atten" else plm_avg_kernel

    # Advisory cost hint so XLA can overlap the kernel with surrounding ops.
    cost = pl.CostEstimate(
        flops=2 * (R + 1) * B_pad * D * E_pad + 4 * B_pad * R * E_pad,
        transcendentals=B_pad * R,
        bytes_accessed=(B_pad * (R + 1) * D * itemsize
                        + D * E_pad * itemsize
                        + B_pad * 2 * E_pad * 4),
    )

    def _call(single_buffer_weight):
        if single_buffer_weight:
            w_spec = pl.BlockSpec((D, E_pad), lambda i: (0, 0),
                                  pipeline_mode=pl.Buffered(1))
            b_spec = pl.BlockSpec((1, E_pad), lambda i: (0, 0),
                                  pipeline_mode=pl.Buffered(1))
        else:
            w_spec = pl.BlockSpec((D, E_pad), lambda i: (0, 0))
            b_spec = pl.BlockSpec((1, E_pad), lambda i: (0, 0))
        return pl.pallas_call(
            kernel,
            out_shape=jax.ShapeDtypeStruct((B_pad, 2 * E_pad), jnp.float32),
            grid_spec=pltpu.PrefetchScalarGridSpec(
                num_scalar_prefetch=0,
                grid=(B_pad // TB,),
                in_specs=[
                    pl.BlockSpec((TB, D), lambda i: (i, 0)),        # content slab
                    pl.BlockSpec((TB, R, D), lambda i: (i, 0, 0)),  # refs slab
                    w_spec,                                         # pre-transposed weight
                    b_spec,                                         # bias
                ],
                out_specs=pl.BlockSpec((TB, 2 * E_pad), lambda i: (i, 0)),
            ),
            compiler_params=pltpu.CompilerParams(
                dimension_semantics=("parallel",),
                vmem_limit_bytes=vmem_limit,
            ),
            cost_estimate=cost,
        )(content, refs, w_t, bias)

    try:
        out = _call(True)
    except Exception:
        # Fallback if this JAX build rejects single-buffered pipeline_mode.
        out = _call(False)

    out = out[:B]
    if E_pad == E:
        return out
    # Un-pad: take the real E lanes of each half (cheap XLA slice/concat outside kernel).
    return jnp.concatenate([out[:, :E], out[:, E_pad:E_pad + E]], axis=1)


def plm_encoder_ref(content, refs, w, b, way_ref):
    """Pure-JAX reference mirroring the PyTorch forward (atten/avg, with_linear, concat)."""
    outs = []
    for i in range(content.shape[0]):
        c = content[i: i + 1] @ w.T + b           # (1, E)
        r = refs[i] @ w.T + b                     # (R, E)
        if way_ref == "atten":
            sim = c @ r.T                         # (1, R)
            attn = jax.nn.softmax(sim, axis=1)    # (1, R)
            agg = (r * attn.T).sum(axis=0, keepdims=True)
        else:
            agg = jnp.mean(r, axis=0, keepdims=True)
        outs.append(jnp.concatenate([c, agg], axis=1))
    return jnp.concatenate(outs, axis=0)


if __name__ == "__main__":
    # Small synthetic shapes consistent with the forward:
    #   B papers, R references each, default_bert_dim -> embed_dim via nn.Linear.
    R, D_BERT, EMBED_DIM = 8, 32, 16

    key = jax.random.PRNGKey(0)
    ok = True

    # Config 1: tiny batch (single grid step). Config 2: multi-block grid + padding path.
    for B, blk in ((2, 128), (20, 8)):
        k_c, k_r, k_w, k_b = jax.random.split(jax.random.fold_in(key, B), 4)
        content_embeddings = jax.random.normal(k_c, (B, D_BERT), dtype=jnp.float32)
        refs_embeddings = jax.random.normal(k_r, (B, R, D_BERT), dtype=jnp.float32)
        # Deterministic nn.Linear(default_bert_dim, embed_dim) params.
        linear_w = jax.random.normal(k_w, (EMBED_DIM, D_BERT), dtype=jnp.float32) * 0.1
        linear_b = jax.random.normal(k_b, (1, EMBED_DIM), dtype=jnp.float32) * 0.01

        for way_ref in ("atten", "avg"):
            ref = plm_encoder_ref(content_embeddings, refs_embeddings,
                                  linear_w, linear_b, way_ref)

            # Tight check: f32 operands (approx-reciprocal softmax -> ~1e-3 level).
            out = plm_encoder_pallas(content_embeddings, refs_embeddings,
                                     linear_w, linear_b, way_ref=way_ref,
                                     block_b=blk, use_bf16=False)
            out = jax.block_until_ready(out)
            if not jnp.allclose(out, ref, atol=2e-3, rtol=2e-3):
                ok = False
                print(f"MISMATCH(f32) B={B} way_ref={way_ref}: max abs err "
                      f"{float(jnp.max(jnp.abs(out - ref)))}")

            # Production (bf16 MXU) path: exercise + sanity-check loosely.
            out_bf16 = plm_encoder_pallas(content_embeddings, refs_embeddings,
                                          linear_w, linear_b, way_ref=way_ref,
                                          block_b=blk, use_bf16=True)
            out_bf16 = jax.block_until_ready(out_bf16)
            if not (bool(jnp.all(jnp.isfinite(out_bf16)))
                    and jnp.allclose(out_bf16, ref, atol=1.5e-1, rtol=1.5e-1)):
                ok = False
                print(f"MISMATCH(bf16) B={B} way_ref={way_ref}: max abs err "
                      f"{float(jnp.max(jnp.abs(out_bf16 - ref)))}")

    if ok:
        print("KERNEL_OK")
</pallas_src>

<mosaic_0001>
module attributes {stable_mosaic.version = 11 : i64} {
  func.func @plm_atten_kernel(%arg0: i32, %arg1: memref<2x32xf32, #tpu.memory_space<vmem>>, %arg2: memref<2x8x32xf32, #tpu.memory_space<vmem>>, %arg3: memref<32x128xf32, #tpu.memory_space<vmem>>, %arg4: memref<1x128xf32, #tpu.memory_space<vmem>>, %arg5: memref<2x256xf32, #tpu.memory_space<vmem>>) attributes {dimension_semantics = [#tpu.dimension_semantics<parallel>], iteration_bounds = array<i64: 1>, scalar_prefetch = 0 : i64, scratch_operands = 0 : i64, tpu.core_type = #tpu.core_type<tc>, window_params = [{transform_indices = @transform_0, window_bounds = array<i64: 2, 32>}, {transform_indices = @transform_1, window_bounds = array<i64: 2, 8, 32>}, {pipeline_mode = #tpu.pipeline_mode<synchronous>, transform_indices = @transform_2, window_bounds = array<i64: 32, 128>}, {pipeline_mode = #tpu.pipeline_mode<synchronous>, transform_indices = @transform_3, window_bounds = array<i64: 1, 128>}, {transform_indices = @transform_4, window_bounds = array<i64: 2, 256>}]} {
    %c0 = arith.constant 0 : index
    %c0_0 = arith.constant 0 : index
    %0 = vector.load %arg3[%c0, %c0_0] : memref<32x128xf32, #tpu.memory_space<vmem>>, vector<32x128xf32>
    %c0_1 = arith.constant 0 : index
    %c0_2 = arith.constant 0 : index
    %1 = vector.load %arg4[%c0_1, %c0_2] : memref<1x128xf32, #tpu.memory_space<vmem>>, vector<1x128xf32>
    %c0_3 = arith.constant 0 : index
    %c0_4 = arith.constant 0 : index
    %2 = vector.load %arg1[%c0_3, %c0_4] : memref<2x32xf32, #tpu.memory_space<vmem>>, vector<2x32xf32>
    %cst = arith.constant dense<0.000000e+00> : vector<2x128xf32>
    %3 = tpu.matmul %2, %0, %cst {dimension_numbers = #tpu.dot_dimension_numbers<[1], [0], [0], [1], [0, 0, 1, 1], [], []>} : vector<2x32xf32>, vector<32x128xf32>, vector<2x128xf32> -> vector<2x128xf32>
    %4 = vector.broadcast %1 : vector<1x128xf32> to vector<2x128xf32>
    %5 = arith.addf %3, %4 : vector<2x128xf32>
    %c0_5 = arith.constant 0 : index
    %c0_6 = arith.constant 0 : index
    %c0_7 = arith.constant 0 : index
    %6 = vector.load %arg2[%c0_5, %c0_6, %c0_7] : memref<2x8x32xf32, #tpu.memory_space<vmem>>, vector<2x8x32xf32>
    %7 = vector.shape_cast %6 : vector<2x8x32xf32> to vector<16x32xf32>
    %cst_8 = arith.constant dense<0.000000e+00> : vector<16x128xf32>
    %8 = tpu.matmul %7, %0, %cst_8 {dimension_numbers = #tpu.dot_dimension_numbers<[1], [0], [0], [1], [0, 0, 1, 1], [], []>} : vector<16x32xf32>, vector<32x128xf32>, vector<16x128xf32> -> vector<16x128xf32>
    %9 = vector.broadcast %1 : vector<1x128xf32> to vector<16x128xf32>
    %10 = arith.addf %8, %9 : vector<16x128xf32>
    %11 = vector.shape_cast %10 : vector<16x128xf32> to vector<2x8x128xf32>
    %12 = vector.shape_cast %5 : vector<2x128xf32> to vector<2x1x128xf32>
    %13 = vector.broadcast %12 : vector<2x1x128xf32> to vector<2x8x128xf32>
    %14 = arith.mulf %13, %11 : vector<2x8x128xf32>
    %cst_9 = arith.constant dense<0.000000e+00> : vector<2x8xf32>
    %15 = vector.multi_reduction <add>, %14, %cst_9 [2] : vector<2x8x128xf32> to vector<2x8xf32>
    %cst_10 = arith.constant dense<0xFF800000> : vector<2xf32>
    %16 = vector.multi_reduction <maximumf>, %15, %cst_10 [1] : vector<2x8xf32> to vector<2xf32>
    %17 = vector.shape_cast %16 : vector<2xf32> to vector<2x1xf32>
    %18 = vector.broadcast %17 : vector<2x1xf32> to vector<2x8xf32>
    %19 = arith.subf %15, %18 : vector<2x8xf32>
    %20 = math.exp %19 : vector<2x8xf32>
    %cst_11 = arith.constant dense<0.000000e+00> : vector<2xf32>
    %21 = vector.multi_reduction <add>, %20, %cst_11 [1] : vector<2x8xf32> to vector<2xf32>
    %22 = vector.shape_cast %21 : vector<2xf32> to vector<2x1xf32>
    %23 = tpu.reciprocal %22 {approx = true} : vector<2x1xf32> -> vector<2x1xf32>
    %24 = vector.broadcast %23 : vector<2x1xf32> to vector<2x8xf32>
    %25 = arith.mulf %20, %24 : vector<2x8xf32>
    %26 = vector.shape_cast %25 : vector<2x8xf32> to vector<2x8x1xf32>
    %27 = vector.broadcast %26 : vector<2x8x1xf32> to vector<2x8x128xf32>
    %28 = arith.mulf %27, %11 : vector<2x8x128xf32>
    %cst_12 = arith.constant dense<0.000000e+00> : vector<2x128xf32>
    %29 = vector.multi_reduction <add>, %28, %cst_12 [1] : vector<2x8x128xf32> to vector<2x128xf32>
    %c0_13 = arith.constant 0 : index
    %c0_14 = arith.constant 0 : index
    %30 = vector.load %arg5[%c0_13, %c0_14] : memref<2x256xf32, #tpu.memory_space<vmem>>, vector<2x128xf32>
    tpu.vector_store %arg5[%c0_13, %c0_14], %5 {strides = array<i32>} : memref<2x256xf32, #tpu.memory_space<vmem>>, vector<2x128xf32>,
    %c0_15 = arith.constant 0 : index
    %c128 = arith.constant 128 : index
    %31 = vector.load %arg5[%c0_15, %c128] : memref<2x256xf32, #tpu.memory_space<vmem>>, vector<2x128xf32>
    tpu.vector_store %arg5[%c0_15, %c128], %29 {strides = array<i32>} : memref<2x256xf32, #tpu.memory_space<vmem>>, vector<2x128xf32>,
    return
  }
  func.func @transform_0(%arg0: i32) -> (i32, i32) {
    %c0_i32 = arith.constant 0 : i32
    %c0_i32_0 = arith.constant 0 : i32
    return %arg0, %c0_i32 : i32, i32
  }
  func.func @transform_1(%arg0: i32) -> (i32, i32, i32) {
    %c0_i32 = arith.constant 0 : i32
    %c0_i32_0 = arith.constant 0 : i32
    %c0_i32_1 = arith.constant 0 : i32
    return %arg0, %c0_i32, %c0_i32_0 : i32, i32, i32
  }
  func.func @transform_2(%arg0: i32) -> (i32, i32) {
    %c0_i32 = arith.constant 0 : i32
    %c0_i32_0 = arith.constant 0 : i32
    %c0_i32_1 = arith.constant 0 : i32
    return %c0_i32, %c0_i32_0 : i32, i32
  }
  func.func @transform_3(%arg0: i32) -> (i32, i32) {
    %c0_i32 = arith.constant 0 : i32
    %c0_i32_0 = arith.constant 0 : i32
    %c0_i32_1 = arith.constant 0 : i32
    return %c0_i32, %c0_i32_0 : i32, i32
  }
  func.func @transform_4(%arg0: i32) -> (i32, i32) {
    %c0_i32 = arith.constant 0 : i32
    %c0_i32_0 = arith.constant 0 : i32
    return %arg0, %c0_i32 : i32, i32
  }
}

module attributes {stable_mosaic.version = 11 : i64} {
  func.func @plm_atten_kernel(%arg0: i32, %arg1: memref<2x32xf32, #tpu.memory_space<vmem>>, %arg2: memref<2x8x32xf32, #tpu.memory_space<vmem>>, %arg3: memref<32x128xf32, #tpu.memory_space<vmem>>, %arg4: memref<1x128xf32, #tpu.memory_space<vmem>>, %arg5: memref<2x256xf32, #tpu.memory_space<vmem>>) attributes {dimension_semantics = [#tpu.dimension_semantics<parallel>], iteration_bounds = array<i64: 1>, scalar_prefetch = 0 : i64, scratch_operands = 0 : i64, tpu.core_type = #tpu.core_type<tc>, window_params = [{transform_indices = @transform_0, window_bounds = array<i64: 2, 32>}, {transform_indices = @transform_1, window_bounds = array<i64: 2, 8, 32>}, {pipeline_mode = #tpu.pipeline_mode<synchronous>, transform_indices = @transform_2, window_bounds = array<i64: 32, 128>}, {pipeline_mode = #tpu.pipeline_mode<synchronous>, transform_indices = @transform_3, window_bounds = array<i64: 1, 128>}, {transform_indices = @transform_4, window_bounds = array<i64: 2, 256>}]} {
    %c0 = arith.constant 0 : index
    %c0_0 = arith.constant 0 : index
    %0 = vector.load %arg3[%c0, %c0_0] : memref<32x128xf32, #tpu.memory_space<vmem>>, vector<32x128xf32>
    %c0_1 = arith.constant 0 : index
    %c0_2 = arith.constant 0 : index
    %1 = vector.load %arg4[%c0_1, %c0_2] : memref<1x128xf32, #tpu.memory_space<vmem>>, vector<1x128xf32>
    %c0_3 = arith.constant 0 : index
    %c0_4 = arith.constant 0 : index
    %2 = vector.load %arg1[%c0_3, %c0_4] : memref<2x32xf32, #tpu.memory_space<vmem>>, vector<2x32xf32>
    %cst = arith.constant dense<0.000000e+00> : vector<2x128xf32>
    %3 = tpu.matmul %2, %0, %cst {dimension_numbers = #tpu.dot_dimension_numbers<[1], [0], [0], [1], [0, 0, 1, 1], [], []>} : vector<2x32xf32>, vector<32x128xf32>, vector<2x128xf32> -> vector<2x128xf32>
    %4 = vector.broadcast %1 : vector<1x128xf32> to vector<2x128xf32>
    %5 = arith.addf %3, %4 : vector<2x128xf32>
    %c0_5 = arith.constant 0 : index
    %c0_6 = arith.constant 0 : index
    %c0_7 = arith.constant 0 : index
    %6 = vector.load %arg2[%c0_5, %c0_6, %c0_7] : memref<2x8x32xf32, #tpu.memory_space<vmem>>, vector<2x8x32xf32>
    %7 = vector.shape_cast %6 : vector<2x8x32xf32> to vector<16x32xf32>
    %cst_8 = arith.constant dense<0.000000e+00> : vector<16x128xf32>
    %8 = tpu.matmul %7, %0, %cst_8 {dimension_numbers = #tpu.dot_dimension_numbers<[1], [0], [0], [1], [0, 0, 1, 1], [], []>} : vector<16x32xf32>, vector<32x128xf32>, vector<16x128xf32> -> vector<16x128xf32>
    %9 = vector.broadcast %1 : vector<1x128xf32> to vector<16x128xf32>
    %10 = arith.addf %8, %9 : vector<16x128xf32>
    %11 = vector.shape_cast %10 : vector<16x128xf32> to vector<2x8x128xf32>
    %12 = vector.shape_cast %5 : vector<2x128xf32> to vector<2x1x128xf32>
    %13 = vector.broadcast %12 : vector<2x1x128xf32> to vector<2x8x128xf32>
    %14 = arith.mulf %13, %11 : vector<2x8x128xf32>
    %cst_9 = arith.constant dense<0.000000e+00> : vector<2x8xf32>
    %15 = vector.multi_reduction <add>, %14, %cst_9 [2] : vector<2x8x128xf32> to vector<2x8xf32>
    %cst_10 = arith.constant dense<0xFF800000> : vector<2xf32>
    %16 = vector.multi_reduction <maximumf>, %15, %cst_10 [1] : vector<2x8xf32> to vector<2xf32>
    %17 = vector.shape_cast %16 : vector<2xf32> to vector<2x1xf32>
    %18 = vector.broadcast %17 : vector<2x1xf32> to vector<2x8xf32>
    %19 = arith.subf %15, %18 : vector<2x8xf32>
    %20 = math.exp %19 : vector<2x8xf32>
    %cst_11 = arith.constant dense<0.000000e+00> : vector<2xf32>
    %21 = vector.multi_reduction <add>, %20, %cst_11 [1] : vector<2x8xf32> to vector<2xf32>
    %22 = vector.shape_cast %21 : vector<2xf32> to vector<2x1xf32>
    %23 = tpu.reciprocal %22 {approx = true} : vector<2x1xf32> -> vector<2x1xf32>
    %24 = vector.broadcast %23 : vector<2x1xf32> to vector<2x8xf32>
    %25 = arith.mulf %20, %24 : vector<2x8xf32>
    %26 = vector.shape_cast %25 : vector<2x8xf32> to vector<2x8x1xf32>
    %27 = vector.broadcast %26 : vector<2x8x1xf32> to vector<2x8x128xf32>
    %28 = arith.mulf %27, %11 : vector<2x8x128xf32>
    %cst_12 = arith.constant dense<0.000000e+00> : vector<2x128xf32>
    %29 = vector.multi_reduction <add>, %28, %cst_12 [1] : vector<2x8x128xf32> to vector<2x128xf32>
    %c0_13 = arith.constant 0 : index
    %c0_14 = arith.constant 0 : index
    %30 = vector.load %arg5[%c0_13, %c0_14] : memref<2x256xf32, #tpu.memory_space<vmem>>, vector<2x128xf32>
    tpu.vector_store %arg5[%c0_13, %c0_14], %5 {strides = array<i32>} : memref<2x256xf32, #tpu.memory_space<vmem>>, vector<2x128xf32>,
    %c0_15 = arith.constant 0 : index
    %c128 = arith.constant 128 : index
    %31 = vector.load %arg5[%c0_15, %c128] : memref<2x256xf32, #tpu.memory_space<vmem>>, vector<2x128xf32>
    tpu.vector_store %arg5[%c0_15, %c128], %29 {strides = array<i32>} : memref<2x256xf32, #tpu.memory_space<vmem>>, vector<2x128xf32>,
    return
  }
  func.func @transform_0(%arg0: i32) -> (i32, i32) {
    %c0_i32 = arith.constant 0 : i32
    %c0_i32_0 = arith.constant 0 : i32
    return %arg0, %c0_i32 : i32, i32
  }
  func.func @transform_1(%arg0: i32) -> (i32, i32, i32) {
    %c0_i32 = arith.constant 0 : i32
    %c0_i32_0 = arith.constant 0 : i32
    %c0_i32_1 = arith.constant 0 : i32
    return %arg0, %c0_i32, %c0_i32_0 : i32, i32, i32
  }
  func.func @transform_2(%arg0: i32) -> (i32, i32) {
    %c0_i32 = arith.constant 0 : i32
    %c0_i32_0 = arith.constant 0 : i32
    %c0_i32_1 = arith.constant 0 : i32
    return %c0_i32, %c0_i32_0 : i32, i32
  }
  func.func @transform_3(%arg0: i32) -> (i32, i32) {
    %c0_i32 = arith.constant 0 : i32
    %c0_i32_0 = arith.constant 0 : i32
    %c0_i32_1 = arith.constant 0 : i32
    return %c0_i32, %c0_i32_0 : i32, i32
  }
  func.func @transform_4(%arg0: i32) -> (i32, i32) {
    %c0_i32 = arith.constant 0 : i32
    %c0_i32_0 = arith.constant 0 : i32
    return %arg0, %c0_i32 : i32, i32
  }
}

</mosaic_0001>

<bundles_post_ra>
// kernel: tpu_custom_call.1
= control target key start
LH: loop header
LB: loop body
LE: loop exit
PB: predicated region body
PF: predicated region fallthrough
CT: control target
= control target key end

     0   :  { %9 = vsyncpa [#allocation3], 0  ;;  %s678_s0 = inlined_call_operand.hbm [shape: f32[2,32], index: 0, kind: input, shape index: {}]   ;;  %s679_s1 = inlined_call_operand.hbm [shape: f32[2,8,32], index: 1, kind: input, shape index: {}]   ;;  %s680_s2 = inlined_call_operand.hbm [shape: f32[32,128], index: 2, kind: input, shape index: {}]   ;;  %s681_s3 = inlined_call_operand.vmem [shape: f32[1,128], index: 3, kind: input, shape index: {}]   ;;  %s682_s4 = inlined_call_operand.hbm [shape: f32[2,256], index: 4, kind: output, shape index: {}]  }
   0x1   :  { %10 = vsyncpa [#allocation6], 0 }
   0x2   :  { %11 = vsyncpa [#allocation4], 0  ;;  %s572_s15 = smov [#allocation5]   ;;  %s478_s19 = scalar_lea.hbm %s679_s1, 256 }
   0x3   :  { %s27_s16 = sshll.u32 %s572_s15, 4  ;;  %p479_p0 = scmp.ne.s32.totalorder %s679_s1, %s478_s19  ;;  %s28_s16 = int_to_ptr.vmem [resolvable:$true] %s27_s16 }
   0x4   :  { %p482_p1 = scmp.lt.u32.totalorder %s478_s19, %s679_s1 }
   0x6   :  { %p484_p2 = pnand %p482_p1, %p479_p0 }
   0x8   :  { %487 = shalt.err (!%p484_p2)
}
   0x9   :  { %s488_s24 = scalar_lea.vmem %s28_s16, 256  ;;  %p493_p4 = scmp.lt.s32.totalorder %s28_s16, %s28_s16 }
   0xa   :  { %p489_p3 = scmp.ne.s32.totalorder %s28_s16, %s488_s24  ;;  %p494_p5 = scmp.lt.s32.totalorder %s488_s24, %s488_s24 }
   0xc   :  { %p495_p6 = por %p494_p5, %p493_p4 }
   0xe   :  { %p496_p7 = pnand %p495_p6, %p489_p3 }
  0x10   :  { %499 = shalt.err (!%p496_p7)
}
  0x11   :  { %s573_s25 = smov 128   ;;  %s574_s26 = smov 8  }
  0x12   :  { %33 = dma.hbm_to_vmem [thread:$0]  %s679_s1, 256, %s28_s16, [#allocation6], %s573_s25, %s573_s25, %s574_s26  }
  0x13   :  { %s575_s29 = smov [#allocation2]   ;;  %s576_s5 = smov [#allocation7]  }
  0x14   :  { %s18_s30 = sshll.u32 %s575_s29, 4  ;;  %s39_s6 = sshll.u32 %s576_s5, 4  ;;  %s19_s30 = int_to_ptr.vmem [resolvable:$true] %s18_s30  ;;  %s40_s6 = int_to_ptr.vmem [resolvable:$true] %s39_s6 }
  0x15   :  { %s500_s9 = scalar_lea.hbm %s678_s0, 32 }
  0x16   :  { %p501_p8 = scmp.ne.s32.totalorder %s678_s0, %s500_s9  ;;  %p504_p9 = scmp.lt.u32.totalorder %s500_s9, %s678_s0 }
  0x18   :  { %p506_p10 = pnand %p504_p9, %p501_p8 }
  0x1a   :  { %509 = shalt.err (!%p506_p10)
}
  0x1b   :  { %s510_s1 = scalar_lea.vmem %s19_s30, 32  ;;  %p515_p12 = scmp.lt.s32.totalorder %s19_s30, %s19_s30 }
  0x1c   :  { %p511_p11 = scmp.ne.s32.totalorder %s19_s30, %s510_s1  ;;  %p516_p13 = scmp.lt.s32.totalorder %s510_s1, %s510_s1 }
  0x1e   :  { %p517_p0 = por %p516_p13, %p515_p12 }
  0x20   :  { %p518_p1 = pnand %p517_p0, %p511_p11 }
  0x22   :  { %521 = shalt.err (!%p518_p1)
}
  0x23   :  { %21 = dma.hbm_to_vmem [thread:$0]  %s678_s0, 32, %s19_s30, [#allocation3]  }
  0x24   :  { %s522_s18 = scalar_lea.hbm %s680_s2, 512 }
  0x25   :  { %p523_p2 = scmp.ne.s32.totalorder %s680_s2, %s522_s18  ;;  %p526_p3 = scmp.lt.u32.totalorder %s522_s18, %s680_s2 }
  0x27   :  { %p528_p4 = pnand %p526_p3, %p523_p2 }
  0x29   :  { %531 = shalt.err (!%p528_p4)
}
  0x2a   :  { %s532_s23 = scalar_lea.vmem %s40_s6, 512  ;;  %p537_p6 = scmp.lt.s32.totalorder %s40_s6, %s40_s6 }
  0x2b   :  { %p533_p5 = scmp.ne.s32.totalorder %s40_s6, %s532_s23  ;;  %p538_p7 = scmp.lt.s32.totalorder %s532_s23, %s532_s23 }
  0x2d   :  { %p539_p8 = por %p538_p7, %p537_p6 }
  0x2f   :  { %p540_p9 = pnand %p539_p8, %p533_p5 }
  0x31   :  { %543 = shalt.err (!%p540_p9)
}
  0x32   :  { %45 = dma.hbm_to_vmem [thread:$0]  %s680_s2, 512, %s40_s6, [#allocation6], %s573_s25, %s573_s25, %s574_s26  }
  0x33   :  { %566 = dma.done.wait [#allocation3], 32  }
  0x34   :  { %567 = vsyncadd [#allocation3], 4294967264 }
  0x35   :  { %568 = dma.done.wait [#allocation6], 768  }
  0x36   :  { %569 = vsyncadd [#allocation6], 4294966528  ;;  %v577_v0 = vmov 0.0|0.0   ;;  %vm578_vm0 = vmmov 0   ;;  %v579_v1 = vmov 0.0   ;;  %v57_v2 = vld [vmem:[#allocation7] sm:$0xff]  ;;  %v230_v13 = vlaneseq }
  0x37   :  { %444 = vmatprep.subr.bf16.mxu0 %v577_v0  ;;  %430 = vmatprep.mubr.msk.f32.mxu0 %vm578_vm0, %v579_v1  ;;  %v58_v3 = vld [vmem:[#allocation7 + $0x8] sm:$0xff]  ;;  %v59_v4 = vld [vmem:[#allocation7 + $0x10] sm:$0xff]  ;;  %v60_v6 = vld [vmem:[#allocation7 + $0x18] sm:$0xff]  ;;  %vm69_vm1 = vcmask 261120   ;;  %v580_v11 = vmov 1966171168  }
  0x38   :  { %v445_v5 = vpack.c.bf16 %v58_v3, %v57_v2  ;;  %v143_v7 = vld [vmem:[#allocation5] sm:$0xff]  ;;  %v448_v8 = vpack.c.bf16 %v60_v6, %v59_v4  ;;  %v62_v9 = vld [vmem:[#allocation2] sm:$0x3]  ;;  %v144_v10 = vld [vmem:[#allocation5 + $0x8] sm:$0xff]  ;;  %v228_v12 = vunpack.c.l.s4 %v580_v11  ;;  %v651_v15 = vshrl.u32 %v230_v13, 7 }
  0x39   :  { %441 = vmatprep.mubr.msk.f32.mxu1 %vm69_vm1, %v143_v7  ;;  %v407_v16 = vld [vmem:[%s681_s3] ss:$0 sm:$0xff]  ;;  %v268_v34 = vand.u32 127, %v230_v13  ;;  %vm277_vm2 = vcmask 1041409   ;;  %vm280_vm3 = vcmask 58368   ;;  %v581_v42 = vmov 0  }
  0x3a   :  { %446 = vmatpush3.bf16.msra.mxu0 %v445_v5  ;;  %451 = vmatprep.subr.bf16.mxu1 %v445_v5  ;;  %v229_v14 = vunpack.c.0.s8 %v228_v12  ;;  %v251_v24 = vsub.s32 0, %v651_v15  ;;  %v291_v43 = vsub.s32 1, %v651_v15  ;;  %v582_v3 = vmov 1983009808   ;;  %s583_s3 = smov [#allocation8]  }
  0x3b   :  { %447 = vmatprep.subr.bf16.mxu0 %v577_v0  ;;  %453 = vmatpush3.bf16.msra.mxu1 %v445_v5  ;;  %v271_v36 = vsub.s32 %v268_v34, %v651_v15  ;;  %v364_v4 = vunpack.c.l.s4 %v582_v3  ;;  %vm383_vm4 = vcmask 1043459   ;;  %vm385_vm5 = vcmask 1045509   ;;  %s397_s26 = sshll.u32 %s583_s3, 4  ;;  %s398_s26 = int_to_ptr.vmem [resolvable:$true] %s397_s26 }
  0x3c   :  { %455 = vmatprep.subr.bf16.mxu1 %v448_v8  ;;  %v232_v17 = vsub.s32 %v229_v14, %v651_v15  ;;  %471 = vset.pattern.permute.xlu0 %v581_v42  ;;  %vm387_vm6 = vcmask 1047559   ;;  %s544_s27 = scalar_lea.vmem %s398_s26, 64  ;;  %p549_p11 = scmp.lt.s32.totalorder %s398_s26, %s398_s26 }
  0x3d   :  { %470 = vset.pattern.permute.xlu1 %v581_v42  ;;  %p545_p10 = scmp.ne.s32.totalorder %s398_s26, %s544_s27  ;;  %p550_p12 = scmp.lt.s32.totalorder %s544_s27, %s544_s27 }
  0x3e   :  { %449 = vmatpush3.bf16.msra.mxu0 %v448_v8 }
  0x3f   :  { %457 = vmatpush3.bf16.msra.mxu1 %v448_v8  ;;  %p551_p13 = por %p550_p12, %p549_p11 }
  0x41   :  { %431 = vmatmul.mubr.msk.f32.vlgmr.msra.gmra.mrb[0].mxu0 %vm69_vm1, %v62_v9  ;;  %v365_v9 = vunpack.c.0.s8 %v364_v4  ;;  %p552_p0 = pnand %p551_p13, %p545_p10 }
  0x42   :  { %442 = vmatmul.mubr.msk.f32.vlgmr.msra.gmra.mrb[0].mxu1 %vm69_vm1, %v144_v10 }
  0x43   :  { %v368_v14 = vsub.s32 %v365_v9, %v651_v15 }
 0x114   :  { %v139_v18 = vpop.f32.mrb[0].mxu0 }
 0x115   :  { %v140_v19 = vadd.f32 %v407_v16, %v139_v18  ;;  %v432_v20 = vpop.f32.mrb[1].mxu0  ;;  %v443_v21 = vpop.f32.mrb[0].mxu1 }
 0x116   :  { %v217_v22 = vpop.f32.mrb[1].mxu1  ;;  %v223_v32 = vadd.f32 %v443_v21, %v407_v16 }
 0x117   :  { %v233_v23 = vrot.slane %v140_v19, %v232_v17  ;;  %360 = vst [vmem:[#allocation8] sm:$0x3] %v140_v19  ;;  %v218_v26 = vadd.f32 %v407_v16, %v217_v22 }
 0x119   :  { %v234_v25 = vcombine.high %v233_v23, %v233_v23  ;;  %v241_v27 = vrot.slane %v233_v23, %v232_v17 }
 0x11b   :  { %v252_v28 = vrot.slane %v241_v27, %v251_v24  ;;  %v248_v29 = vrot.slane %v234_v25, %v232_v17 }
 0x11d   :  { %v259_v30 = vmul.f32 %v252_v28, %v218_v26  ;;  %v256_v31 = vrot.slane %v248_v29, %v251_v24 }
 0x11f   :  { %261 = vadd.xlane.f32.xlu0 %v259_v30  ;;  %v260_v33 = vmul.f32 %v256_v31, %v223_v32 }
 0x123   :  { %263 = vadd.xlane.f32.xlu0 %v260_v33 }
 0x1ac   :  { %v262_v35 = vpop.xlane.xlu0 %261 }
 0x1ad   :  { %v272_v38 = vrot.slane %v262_v35, %v271_v36 }
 0x1b0   :  { %v264_v37 = vpop.xlane.xlu0 %263 }
 0x1b1   :  { %v276_v39 = vrot.slane %v264_v37, %v271_v36 }
 0x1b3   :  { %v278_v40 = vsel %vm277_vm2, %v276_v39, %v272_v38 }
 0x1b4   :  { %v281_v41 = vsel %vm280_vm3, %v278_v40, -inf }
 0x1b5   :  { %282 = vmax.xlane.f32.xlu1 %v281_v41 }
 0x242   :  { %v283_v44 = vpop.xlane.xlu1 %282 }
 0x243   :  { %v288_v45 = vrot.slane %v283_v44, %v251_v24  ;;  %v292_v46 = vrot.slane %v283_v44, %v291_v43 }
 0x245   :  { %v295_v47 = vsub.f32 %v262_v35, %v288_v45  ;;  %v296_v48 = vsub.f32 %v264_v37, %v292_v46 }
 0x247   :  { %v297_v49 = vmul.f32 1.442695, %v295_v47  ;;  %v299_v50 = vmul.f32 1.442695, %v296_v48 }
 0x249   :  { %472 = vpow2.f32 %v297_v49 }
 0x24a   :  { %474 = vpow2.f32 %v299_v50 }
 0x253   :  { %v473_v51 = vpop.eup %472 }
 0x254   :  { %v475_v52 = vpop.eup %474  ;;  %304 = vperm.xlu1 %470, %v473_v51  }
 0x255   :  { %307 = vperm.xlu0 %471, %v475_v52  }
 0x2d3   :  { %v305_v53 = vpop.permute.xlu1 %304 }
 0x2d4   :  { %v308_v54 = vpop.permute.xlu0 %307  ;;  %v312_v55 = vrot.slane %v305_v53, %v271_v36 }
 0x2d5   :  { %v316_v56 = vrot.slane %v308_v54, %v271_v36 }
 0x2d7   :  { %v317_v57 = vsel %vm277_vm2, %v316_v56, %v312_v55 }
 0x2d8   :  { %v319_v58 = vsel %vm280_vm3, %v317_v57, 0.0 }
 0x2d9   :  { %320 = vadd.xlane.f32.xlu1 %v319_v58 }
 0x366   :  { %v321_v59 = vpop.xlane.xlu1 %320 }
 0x367   :  { %476 = vrcp.f32 %v321_v59 }
 0x371   :  { %v477_v60 = vpop.eup %476 }
 0x372   :  { %v331_v61 = vrot.slane %v477_v60, %v291_v43  ;;  %v327_v63 = vrot.slane %v477_v60, %v251_v24 }
 0x374   :  { %v335_v62 = vmul.f32 %v475_v52, %v331_v61  ;;  %v334_v0 = vmul.f32 %v473_v51, %v327_v63 }
 0x376   :  { %343 = vperm.xlu0 %471, %v335_v62  }
 0x37a   :  { %338 = vperm.xlu0 %471, %v334_v0  }
 0x3f5   :  { %v344_v1 = vpop.permute.xlu0 %343 }
 0x3f6   :  { %v347_v2 = vmul.f32 %v344_v1, %v223_v32 }
 0x3f8   :  { %v354_v5 = vrot.slane %v347_v2, 4 }
 0x3f9   :  { %v339_v6 = vpop.permute.xlu0 %338 }
 0x3fa   :  { %v355_v7 = vadd.f32 %v354_v5, %v347_v2  ;;  %v346_v8 = vmul.f32 %v339_v6, %v218_v26 }
 0x3fc   :  { %v356_v10 = vrot.slane %v355_v7, 2  ;;  %v348_v11 = vrot.slane %v346_v8, 4 }
 0x3fe   :  { %v357_v12 = vadd.f32 %v356_v10, %v355_v7  ;;  %v349_v13 = vadd.f32 %v348_v11, %v346_v8 }
 0x400   :  { %v358_v16 = vrot.slane %v357_v12, 1  ;;  %v350_v17 = vrot.slane %v349_v13, 2 }
 0x402   :  { %v359_v18 = vadd.f32 %v358_v16, %v357_v12  ;;  %v351_v19 = vadd.f32 %v350_v17, %v349_v13 }
 0x404   :  { %v376_v20 = vrot.slane %v359_v18, %v368_v14  ;;  %v352_v21 = vrot.slane %v351_v19, 1 }
 0x406   :  { %v353_v22 = vadd.f32 %v352_v21, %v351_v19  ;;  %v381_v23 = vrot.slane %v376_v20, 7 }
 0x408   :  { %v369_v24 = vrot.slane %v353_v22, %v368_v14 }
 0x40a   :  { %v382_v25 = vsel %vm277_vm2, %v381_v23, %v369_v24 }
 0x40b   :  { %v384_v26 = vsel %vm383_vm4, %v381_v23, %v382_v25 }
 0x40c   :  { %v386_v27 = vsel %vm385_vm5, %v381_v23, %v384_v26 }
 0x40d   :  { %v388_v15 = vsel %vm387_vm6, %v381_v23, %v386_v27 }
 0x40e   :  { %390 = vst [vmem:[#allocation8 + $0x2] sm:$0x3] %v388_v15 }
 0x40f   :  { %555 = shalt.err (!%p552_p0)
}
 0x410   :  { %s556_s30 = scalar_lea.hbm %s682_s4, 64 }
 0x411   :  { %p557_p1 = scmp.ne.s32.totalorder %s682_s4, %s556_s30  ;;  %p560_p2 = scmp.lt.u32.totalorder %s556_s30, %s682_s4 }
 0x413   :  { %p562_p3 = pnand %p560_p2, %p557_p1 }
 0x415   :  { %565 = shalt.err (!%p562_p3)
}
 0x416   :  { %400 = dma.vmem_to_hbm [thread:$0]  %s398_s26, 64, %s682_s4, [#allocation4]  }
 0x417   :  { %570 = dma.done.wait [#allocation4], 64  }
 0x418   :  { %571 = vsyncadd [#allocation4], 4294967232 }
 0x419   :  { %404 = vsyncpa [#allocation3], 1 }
 0x41a   :  { %405 = vsyncpa [#allocation6], 1 }
 0x41b   :  { %406 = vsyncpa [#allocation4], 1 }

// kernel: tpu_custom_call.1
= control target key start
LH: loop header
LB: loop body
LE: loop exit
PB: predicated region body
PF: predicated region fallthrough
CT: control target
= control target key end

     0   :  { %9 = vsyncpa [#allocation3], 0  ;;  %s678_s0 = inlined_call_operand.hbm [shape: f32[2,32], index: 0, kind: input, shape index: {}]   ;;  %s679_s1 = inlined_call_operand.hbm [shape: f32[2,8,32], index: 1, kind: input, shape index: {}]   ;;  %s680_s2 = inlined_call_operand.hbm [shape: f32[32,128], index: 2, kind: input, shape index: {}]   ;;  %s681_s3 = inlined_call_operand.vmem [shape: f32[1,128], index: 3, kind: input, shape index: {}]   ;;  %s682_s4 = inlined_call_operand.hbm [shape: f32[2,256], index: 4, kind: output, shape index: {}]  }
   0x1   :  { %10 = vsyncpa [#allocation6], 0 }
   0x2   :  { %11 = vsyncpa [#allocation4], 0  ;;  %s572_s15 = smov [#allocation5]   ;;  %s478_s19 = scalar_lea.hbm %s679_s1, 256 }
   0x3   :  { %s27_s16 = sshll.u32 %s572_s15, 4  ;;  %p479_p0 = scmp.ne.s32.totalorder %s679_s1, %s478_s19  ;;  %s28_s16 = int_to_ptr.vmem [resolvable:$true] %s27_s16 }
   0x4   :  { %p482_p1 = scmp.lt.u32.totalorder %s478_s19, %s679_s1 }
   0x6   :  { %p484_p2 = pnand %p482_p1, %p479_p0 }
   0x8   :  { %487 = shalt.err (!%p484_p2)
}
   0x9   :  { %s488_s24 = scalar_lea.vmem %s28_s16, 256  ;;  %p493_p4 = scmp.lt.s32.totalorder %s28_s16, %s28_s16 }
   0xa   :  { %p489_p3 = scmp.ne.s32.totalorder %s28_s16, %s488_s24  ;;  %p494_p5 = scmp.lt.s32.totalorder %s488_s24, %s488_s24 }
   0xc   :  { %p495_p6 = por %p494_p5, %p493_p4 }
   0xe   :  { %p496_p7 = pnand %p495_p6, %p489_p3 }
  0x10   :  { %499 = shalt.err (!%p496_p7)
}
  0x11   :  { %s573_s25 = smov 128   ;;  %s574_s26 = smov 8  }
  0x12   :  { %33 = dma.hbm_to_vmem [thread:$0]  %s679_s1, 256, %s28_s16, [#allocation6], %s573_s25, %s573_s25, %s574_s26  }
  0x13   :  { %s575_s29 = smov [#allocation2]   ;;  %s576_s5 = smov [#allocation7]  }
  0x14   :  { %s18_s30 = sshll.u32 %s575_s29, 4  ;;  %s39_s6 = sshll.u32 %s576_s5, 4  ;;  %s19_s30 = int_to_ptr.vmem [resolvable:$true] %s18_s30  ;;  %s40_s6 = int_to_ptr.vmem [resolvable:$true] %s39_s6 }
  0x15   :  { %s500_s9 = scalar_lea.hbm %s678_s0, 32 }
  0x16   :  { %p501_p8 = scmp.ne.s32.totalorder %s678_s0, %s500_s9  ;;  %p504_p9 = scmp.lt.u32.totalorder %s500_s9, %s678_s0 }
  0x18   :  { %p506_p10 = pnand %p504_p9, %p501_p8 }
  0x1a   :  { %509 = shalt.err (!%p506_p10)
}
  0x1b   :  { %s510_s1 = scalar_lea.vmem %s19_s30, 32  ;;  %p515_p12 = scmp.lt.s32.totalorder %s19_s30, %s19_s30 }
  0x1c   :  { %p511_p11 = scmp.ne.s32.totalorder %s19_s30, %s510_s1  ;;  %p516_p13 = scmp.lt.s32.totalorder %s510_s1, %s510_s1 }
  0x1e   :  { %p517_p0 = por %p516_p13, %p515_p12 }
  0x20   :  { %p518_p1 = pnand %p517_p0, %p511_p11 }
  0x22   :  { %521 = shalt.err (!%p518_p1)
}
  0x23   :  { %21 = dma.hbm_to_vmem [thread:$0]  %s678_s0, 32, %s19_s30, [#allocation3]  }
  0x24   :  { %s522_s18 = scalar_lea.hbm %s680_s2, 512 }
  0x25   :  { %p523_p2 = scmp.ne.s32.totalorder %s680_s2, %s522_s18  ;;  %p526_p3 = scmp.lt.u32.totalorder %s522_s18, %s680_s2 }
  0x27   :  { %p528_p4 = pnand %p526_p3, %p523_p2 }
  0x29   :  { %531 = shalt.err (!%p528_p4)
}
  0x2a   :  { %s532_s23 = scalar_lea.vmem %s40_s6, 512  ;;  %p537_p6 = scmp.lt.s32.totalorder %s40_s6, %s40_s6 }
  0x2b   :  { %p533_p5 = scmp.ne.s32.totalorder %s40_s6, %s532_s23  ;;  %p538_p7 = scmp.lt.s32.totalorder %s532_s23, %s532_s23 }
  0x2d   :  { %p539_p8 = por %p538_p7, %p537_p6 }
  0x2f   :  { %p540_p9 = pnand %p539_p8, %p533_p5 }
  0x31   :  { %543 = shalt.err (!%p540_p9)
}
  0x32   :  { %45 = dma.hbm_to_vmem [thread:$0]  %s680_s2, 512, %s40_s6, [#allocation6], %s573_s25, %s573_s25, %s574_s26  }
  0x33   :  { %566 = dma.done.wait [#allocation3], 32  }
  0x34   :  { %567 = vsyncadd [#allocation3], 4294967264 }
  0x35   :  { %568 = dma.done.wait [#allocation6], 768  }
  0x36   :  { %569 = vsyncadd [#allocation6], 4294966528  ;;  %v577_v0 = vmov 0.0|0.0   ;;  %vm578_vm0 = vmmov 0   ;;  %v579_v1 = vmov 0.0   ;;  %v57_v2 = vld [vmem:[#allocation7] sm:$0xff]  ;;  %v230_v13 = vlaneseq }
  0x37   :  { %444 = vmatprep.subr.bf16.mxu0 %v577_v0  ;;  %430 = vmatprep.mubr.msk.f32.mxu0 %vm578_vm0, %v579_v1  ;;  %v58_v3 = vld [vmem:[#allocation7 + $0x8] sm:$0xff]  ;;  %v59_v4 = vld [vmem:[#allocation7 + $0x10] sm:$0xff]  ;;  %v60_v6 = vld [vmem:[#allocation7 + $0x18] sm:$0xff]  ;;  %vm69_vm1 = vcmask 261120   ;;  %v580_v11 = vmov 1966171168  }
  0x38   :  { %v445_v5 = vpack.c.bf16 %v58_v3, %v57_v2  ;;  %v143_v7 = vld [vmem:[#allocation5] sm:$0xff]  ;;  %v448_v8 = vpack.c.bf16 %v60_v6, %v59_v4  ;;  %v62_v9 = vld [vmem:[#allocation2] sm:$0x3]  ;;  %v144_v10 = vld [vmem:[#allocation5 + $0x8] sm:$0xff]  ;;  %v228_v12 = vunpack.c.l.s4 %v580_v11  ;;  %v651_v15 = vshrl.u32 %v230_v13, 7 }
  0x39   :  { %441 = vmatprep.mubr.msk.f32.mxu1 %vm69_vm1, %v143_v7  ;;  %v407_v16 = vld [vmem:[%s681_s3] ss:$0 sm:$0xff]  ;;  %v268_v34 = vand.u32 127, %v230_v13  ;;  %vm277_vm2 = vcmask 1041409   ;;  %vm280_vm3 = vcmask 58368   ;;  %v581_v42 = vmov 0  }
  0x3a   :  { %446 = vmatpush3.bf16.msra.mxu0 %v445_v5  ;;  %451 = vmatprep.subr.bf16.mxu1 %v445_v5  ;;  %v229_v14 = vunpack.c.0.s8 %v228_v12  ;;  %v251_v24 = vsub.s32 0, %v651_v15  ;;  %v291_v43 = vsub.s32 1, %v651_v15  ;;  %v582_v3 = vmov 1983009808   ;;  %s583_s3 = smov [#allocation8]  }
  0x3b   :  { %447 = vmatprep.subr.bf16.mxu0 %v577_v0  ;;  %453 = vmatpush3.bf16.msra.mxu1 %v445_v5  ;;  %v271_v36 = vsub.s32 %v268_v34, %v651_v15  ;;  %v364_v4 = vunpack.c.l.s4 %v582_v3  ;;  %vm383_vm4 = vcmask 1043459   ;;  %vm385_vm5 = vcmask 1045509   ;;  %s397_s26 = sshll.u32 %s583_s3, 4  ;;  %s398_s26 = int_to_ptr.vmem [resolvable:$true] %s397_s26 }
  0x3c   :  { %455 = vmatprep.subr.bf16.mxu1 %v448_v8  ;;  %v232_v17 = vsub.s32 %v229_v14, %v651_v15  ;;  %471 = vset.pattern.permute.xlu0 %v581_v42  ;;  %vm387_vm6 = vcmask 1047559   ;;  %s544_s27 = scalar_lea.vmem %s398_s26, 64  ;;  %p549_p11 = scmp.lt.s32.totalorder %s398_s26, %s398_s26 }
  0x3d   :  { %470 = vset.pattern.permute.xlu1 %v581_v42  ;;  %p545_p10 = scmp.ne.s32.totalorder %s398_s26, %s544_s27  ;;  %p550_p12 = scmp.lt.s32.totalorder %s544_s27, %s544_s27 }
  0x3e   :  { %449 = vmatpush3.bf16.msra.mxu0 %v448_v8 }
  0x3f   :  { %457 = vmatpush3.bf16.msra.mxu1 %v448_v8  ;;  %p551_p13 = por %p550_p12, %p549_p11 }
  0x41   :  { %431 = vmatmul.mubr.msk.f32.vlgmr.msra.gmra.mrb[0].mxu0 %vm69_vm1, %v62_v9  ;;  %v365_v9 = vunpack.c.0.s8 %v364_v4  ;;  %p552_p0 = pnand %p551_p13, %p545_p10 }
  0x42   :  { %442 = vmatmul.mubr.msk.f32.vlgmr.msra.gmra.mrb[0].mxu1 %vm69_vm1, %v144_v10 }
  0x43   :  { %v368_v14 = vsub.s32 %v365_v9, %v651_v15 }
 0x114   :  { %v139_v18 = vpop.f32.mrb[0].mxu0 }
 0x115   :  { %v140_v19 = vadd.f32 %v407_v16, %v139_v18  ;;  %v432_v20 = vpop.f32.mrb[1].mxu0  ;;  %v443_v21 = vpop.f32.mrb[0].mxu1 }
 0x116   :  { %v217_v22 = vpop.f32.mrb[1].mxu1  ;;  %v223_v32 = vadd.f32 %v443_v21, %v407_v16 }
 0x117   :  { %v233_v23 = vrot.slane %v140_v19, %v232_v17  ;;  %360 = vst [vmem:[#allocation8] sm:$0x3] %v140_v19  ;;  %v218_v26 = vadd.f32 %v407_v16, %v217_v22 }
 0x119   :  { %v234_v25 = vcombine.high %v233_v23, %v233_v23  ;;  %v241_v27 = vrot.slane %v233_v23, %v232_v17 }
 0x11b   :  { %v252_v28 = vrot.slane %v241_v27, %v251_v24  ;;  %v248_v29 = vrot.slane %v234_v25, %v232_v17 }
 0x11d   :  { %v259_v30 = vmul.f32 %v252_v28, %v218_v26  ;;  %v256_v31 = vrot.slane %v248_v29, %v251_v24 }
 0x11f   :  { %261 = vadd.xlane.f32.xlu0 %v259_v30  ;;  %v260_v33 = vmul.f32 %v256_v31, %v223_v32 }
 0x123   :  { %263 = vadd.xlane.f32.xlu0 %v260_v33 }
 0x1ac   :  { %v262_v35 = vpop.xlane.xlu0 %261 }
 0x1ad   :  { %v272_v38 = vrot.slane %v262_v35, %v271_v36 }
 0x1b0   :  { %v264_v37 = vpop.xlane.xlu0 %263 }
 0x1b1   :  { %v276_v39 = vrot.slane %v264_v37, %v271_v36 }
 0x1b3   :  { %v278_v40 = vsel %vm277_vm2, %v276_v39, %v272_v38 }
 0x1b4   :  { %v281_v41 = vsel %vm280_vm3, %v278_v40, -inf }
 0x1b5   :  { %282 = vmax.xlane.f32.xlu1 %v281_v41 }
 0x242   :  { %v283_v44 = vpop.xlane.xlu1 %282 }
 0x243   :  { %v288_v45 = vrot.slane %v283_v44, %v251_v24  ;;  %v292_v46 = vrot.slane %v283_v44, %v291_v43 }
 0x245   :  { %v295_v47 = vsub.f32 %v262_v35, %v288_v45  ;;  %v296_v48 = vsub.f32 %v264_v37, %v292_v46 }
 0x247   :  { %v297_v49 = vmul.f32 1.442695, %v295_v47  ;;  %v299_v50 = vmul.f32 1.442695, %v296_v48 }
 0x249   :  { %472 = vpow2.f32 %v297_v49 }
 0x24a   :  { %474 = vpow2.f32 %v299_v50 }
 0x253   :  { %v473_v51 = vpop.eup %472 }
 0x254   :  { %v475_v52 = vpop.eup %474  ;;  %304 = vperm.xlu1 %470, %v473_v51  }
 0x255   :  { %307 = vperm.xlu0 %471, %v475_v52  }
 0x2d3   :  { %v305_v53 = vpop.permute.xlu1 %304 }
 0x2d4   :  { %v308_v54 = vpop.permute.xlu0 %307  ;;  %v312_v55 = vrot.slane %v305_v53, %v271_v36 }
 0x2d5   :  { %v316_v56 = vrot.slane %v308_v54, %v271_v36 }
 0x2d7   :  { %v317_v57 = vsel %vm277_vm2, %v316_v56, %v312_v55 }
 0x2d8   :  { %v319_v58 = vsel %vm280_vm3, %v317_v57, 0.0 }
 0x2d9   :  { %320 = vadd.xlane.f32.xlu1 %v319_v58 }
 0x366   :  { %v321_v59 = vpop.xlane.xlu1 %320 }
 0x367   :  { %476 = vrcp.f32 %v321_v59 }
 0x371   :  { %v477_v60 = vpop.eup %476 }
 0x372   :  { %v331_v61 = vrot.slane %v477_v60, %v291_v43  ;;  %v327_v63 = vrot.slane %v477_v60, %v251_v24 }
 0x374   :  { %v335_v62 = vmul.f32 %v475_v52, %v331_v61  ;;  %v334_v0 = vmul.f32 %v473_v51, %v327_v63 }
 0x376   :  { %343 = vperm.xlu0 %471, %v335_v62  }
 0x37a   :  { %338 = vperm.xlu0 %471, %v334_v0  }
 0x3f5   :  { %v344_v1 = vpop.permute.xlu0 %343 }
 0x3f6   :  { %v347_v2 = vmul.f32 %v344_v1, %v223_v32 }
 0x3f8   :  { %v354_v5 = vrot.slane %v347_v2, 4 }
 0x3f9   :  { %v339_v6 = vpop.permute.xlu0 %338 }
 0x3fa   :  { %v355_v7 = vadd.f32 %v354_v5, %v347_v2  ;;  %v346_v8 = vmul.f32 %v339_v6, %v218_v26 }
 0x3fc   :  { %v356_v10 = vrot.slane %v355_v7, 2  ;;  %v348_v11 = vrot.slane %v346_v8, 4 }
 0x3fe   :  { %v357_v12 = vadd.f32 %v356_v10, %v355_v7  ;;  %v349_v13 = vadd.f32 %v348_v11, %v346_v8 }
 0x400   :  { %v358_v16 = vrot.slane %v357_v12, 1  ;;  %v350_v17 = vrot.slane %v349_v13, 2 }
 0x402   :  { %v359_v18 = vadd.f32 %v358_v16, %v357_v12  ;;  %v351_v19 = vadd.f32 %v350_v17, %v349_v13 }
 0x404   :  { %v376_v20 = vrot.slane %v359_v18, %v368_v14  ;;  %v352_v21 = vrot.slane %v351_v19, 1 }
 0x406   :  { %v353_v22 = vadd.f32 %v352_v21, %v351_v19  ;;  %v381_v23 = vrot.slane %v376_v20, 7 }
 0x408   :  { %v369_v24 = vrot.slane %v353_v22, %v368_v14 }
 0x40a   :  { %v382_v25 = vsel %vm277_vm2, %v381_v23, %v369_v24 }
 0x40b   :  { %v384_v26 = vsel %vm383_vm4, %v381_v23, %v382_v25 }
 0x40c   :  { %v386_v27 = vsel %vm385_vm5, %v381_v23, %v384_v26 }
 0x40d   :  { %v388_v15 = vsel %vm387_vm6, %v381_v23, %v386_v27 }
 0x40e   :  { %390 = vst [vmem:[#allocation8 + $0x2] sm:$0x3] %v388_v15 }
 0x40f   :  { %555 = shalt.err (!%p552_p0)
}
 0x410   :  { %s556_s30 = scalar_lea.hbm %s682_s4, 64 }
 0x411   :  { %p557_p1 = scmp.ne.s32.totalorder %s682_s4, %s556_s30  ;;  %p560_p2 = scmp.lt.u32.totalorder %s556_s30, %s682_s4 }
 0x413   :  { %p562_p3 = pnand %p560_p2, %p557_p1 }
 0x415   :  { %565 = shalt.err (!%p562_p3)
}
 0x416   :  { %400 = dma.vmem_to_hbm [thread:$0]  %s398_s26, 64, %s682_s4, [#allocation4]  }
 0x417   :  { %570 = dma.done.wait [#allocation4], 64  }
 0x418   :  { %571 = vsyncadd [#allocation4], 4294967232 }
 0x419   :  { %404 = vsyncpa [#allocation3], 1 }
 0x41a   :  { %405 = vsyncpa [#allocation6], 1 }
 0x41b   :  { %406 = vsyncpa [#allocation4], 1 }

</bundles_post_ra>
